<compile_context>
chip_gen: v5e
topology: v5e:2x2
jax: 0.10.0
libtpu: 0.0.40
codegen_flags: <defaults>
</compile_context>

<pallas_src>
import jax
import jax.numpy as jnp
from jax import lax
from jax.experimental import pallas as pl
from jax.experimental.pallas import tpu as pltpu

# ----------------------------- model config ---------------------------------
B, T = 2, 8                  # batch, sequence length
E, H = 32, 32                # embedding_dim, hidden_dim
FC = 512                     # fixed by the module (nn.Linear(2*hidden, 512))
HEAD_PAD = 128               # lane-dense padded fused-head width
# TODO(synk): DeepPavlov/rubert-base-cased has vocab_size=119547; shrunk to a
# synthetic vocab since no tokenizer/checkpoint is loaded here.
VOCAB = 1000
OUTPUT_CONFIG = [
    ("head_a", "categorical", 3),
    ("head_b", "numerical", 1),
    ("head_c", "categorical", 5),
]
N_OUT = sum(n if t == "categorical" else 1 for _, t, n in OUTPUT_CONFIG)


# ------------------------------ Pallas kernel --------------------------------
def multi_output_kernel(gx_ref, whh_ref, wfc_ref, bfc_ref,
                        whead_ref, bhead_ref, mask_ref, out_ref):
    # gx_ref : (T, B, 8H) f32  precomposed gate pre-activations (biases folded).
    #          fwd gate columns already hold time s, bwd columns time T-1-s.
    # whh_ref: (2H, 8H) bf16   block-diagonal recurrent weight.
    Tn = gx_ref.shape[0]
    Bn = gx_ref.shape[1]
    H2 = whh_ref.shape[0]            # 2H
    Hd = H2 // 2
    bf16 = jnp.bfloat16

    whh = whh_ref[...]               # (2H, 8H) bf16, loaded once

    h = jnp.zeros((Bn, H2), jnp.float32)     # [h_f | h_b]
    c = jnp.zeros((Bn, H2), jnp.float32)
    acc = jnp.zeros((Bn, H2), jnp.float32)

    # Fully unrolled time loop (T small & static).  Both directions advance via
    # a single block-diagonal matmul per step; gate columns are
    # [i(2H) | f(2H) | o(2H) | g(2H)] with each 2H block laid out [fwd | bwd].
    for s in range(Tn):
        gates = gx_ref[s] + jnp.dot(h.astype(bf16), whh,
                                    preferred_element_type=jnp.float32)   # (B,8H)
        # Lane-dense nonlinearities: sigmoid(x) == 0.5*(tanh(0.5*x)+1) -> one
        # EUP push over the contiguous 6H sigmoid block, one over the 2H g block.
        sig = 0.5 * jnp.tanh(0.5 * gates[:, 0:6 * Hd]) + 0.5
        g = jnp.tanh(gates[:, 6 * Hd:8 * Hd])
        i_g = sig[:, 0:H2]
        f_g = sig[:, H2:2 * H2]
        o_g = sig[:, 2 * H2:3 * H2]
        c = f_g * c + i_g * g
        h = o_g * jnp.tanh(c)
        acc = acc + h

    mean = acc * (1.0 / Tn)          # (B, 2H) == [mean_fwd | mean_bwd]

    # fc over the concatenated means: single (2H, FC) matmul.
    fc = (jnp.dot(mean.astype(bf16), wfc_ref[...],
                  preferred_element_type=jnp.float32) + bfc_ref[...])
    fc = jnp.maximum(fc, 0.0)        # relu

    # All heads fused into one lane-dense (FC, 128) matmul; sigmoid applied
    # only to the numerical head's column via the mask (padding cols pass-thru).
    z = (jnp.dot(fc.astype(bf16), whead_ref[...],
                 preferred_element_type=jnp.float32) + bhead_ref[...])
    out_ref[...] = jnp.where(mask_ref[...] > 0.5, jax.nn.sigmoid(z), z)


# ------------------------------ wrapper (glue) --------------------------------
def multi_output_forward(tokens, params):
    Bn, Tn = tokens.shape
    # TODO(synk): at rubert scale (vocab=119547) keep the precomposed gate table
    # in HBM (BlockSpec(memory_space=pl.ANY)) and gather rows in-kernel with
    # scalar-prefetched token ids + manually double-buffered DMAs; do NOT park
    # the table in VMEM (v7x has only 64 MiB physical VMEM).
    g = jnp.take(params["gate_table"], tokens, axis=0)          # (B, T, 8H) f32
    # fwd gate columns read time s, bwd gate columns read time T-1-s.
    gx = jnp.where(params["fwd_col_mask"], g, g[:, ::-1, :])    # (B, T, 8H)
    gx = jnp.transpose(gx, (1, 0, 2))                           # (T, B, 8H)

    args = (gx, params["whh_bd"], params["wfc_t"], params["b_fc"],
            params["whead_t"], params["b_head"], params["sigmoid_mask"])

    flops = (2 * Tn * Bn * (2 * H) * (8 * H)      # block-diag recurrence
             + 2 * Bn * (2 * H) * FC              # fc
             + 2 * Bn * FC * HEAD_PAD)            # fused heads (padded)
    transcendentals = Tn * Bn * (6 * H + 2 * H + 2 * H) + Bn * HEAD_PAD
    bytes_accessed = int(sum(int(a.size) * a.dtype.itemsize for a in args)
                         + Bn * HEAD_PAD * 4)

    vmem = pl.BlockSpec(memory_space=pltpu.MemorySpace.VMEM)
    out = pl.pallas_call(
        multi_output_kernel,
        out_shape=jax.ShapeDtypeStruct((Bn, HEAD_PAD), jnp.float32),
        in_specs=[vmem] * len(args),
        out_specs=vmem,
        cost_estimate=pl.CostEstimate(flops=flops,
                                      transcendentals=transcendentals,
                                      bytes_accessed=bytes_accessed),
    )(*args)
    # NOTE: at real batch sizes add a batch grid with
    # compiler_params=pltpu.CompilerParams(dimension_semantics=("parallel",))
    # so both v7x TensorCores are used; weight index_maps should return a
    # constant block index to keep them VMEM-resident across batch tiles.
    return out[:, :N_OUT]


# ------------------------------ parameter init --------------------------------
def init_params(key):
    ks = jax.random.split(key, 12)
    bf16 = jnp.bfloat16

    def u(k, shape, scale=0.1):
        return jax.random.uniform(k, shape, jnp.float32, -1.0, 1.0) * scale

    emb = u(ks[0], (VOCAB, E), 0.5)
    wih_f, whh_f = u(ks[1], (4 * H, E)), u(ks[2], (4 * H, H))
    bih_f, bhh_f = u(ks[3], (4 * H,)), u(ks[4], (4 * H,))
    wih_b, whh_b = u(ks[5], (4 * H, E)), u(ks[6], (4 * H, H))
    bih_b, bhh_b = u(ks[7], (4 * H,)), u(ks[8], (4 * H,))
    wfc, bfc = u(ks[9], (FC, 2 * H)), u(ks[10], (FC,))

    head_ws, head_bs, mask = [], [], []
    hkeys = jax.random.split(ks[11], 2 * len(OUTPUT_CONFIG))
    for i, (_, type_, ncls) in enumerate(OUTPUT_CONFIG):
        n = ncls if type_ == "categorical" else 1
        head_ws.append(u(hkeys[2 * i], (n, FC)))
        head_bs.append(u(hkeys[2 * i + 1], (n,)))
        mask.append(jnp.full((n,), 0.0 if type_ == "categorical" else 1.0,
                             jnp.float32))
    whead = jnp.concatenate(head_ws, axis=0)           # (N_OUT, FC)
    bhead = jnp.concatenate(head_bs, axis=0)           # (N_OUT,)
    mask = jnp.concatenate(mask, axis=0)               # (N_OUT,)

    raw = dict(embedding=emb, wih_f=wih_f, whh_f=whh_f, bih_f=bih_f,
               bhh_f=bhh_f, wih_b=wih_b, whh_b=whh_b, bih_b=bih_b,
               bhh_b=bhh_b, wfc=wfc, bfc=bfc, whead=whead, bhead=bhead,
               mask=mask)

    # ----- kernel-ready params -----
    # Gate column layout (width 8H): [i(2H) | f(2H) | o(2H) | g(2H)], each 2H
    # block laid out [fwd | bwd].  PyTorch LSTM row-block order is [i, f, g, o].
    def gate_cols(w_f_t, w_b_t):        # (K,4H),(K,4H) -> (K,8H) reordered
        def blk(w, idx):
            return w[:, idx * H:(idx + 1) * H]
        return jnp.concatenate([blk(w_f_t, 0), blk(w_b_t, 0),    # i
                                blk(w_f_t, 1), blk(w_b_t, 1),    # f
                                blk(w_f_t, 3), blk(w_b_t, 3),    # o
                                blk(w_f_t, 2), blk(w_b_t, 2)],   # g
                               axis=1)

    # Precompose embedding with W_ih (both directions, biases folded) -> table.
    wih_g = gate_cols(wih_f.T, wih_b.T)                           # (E, 8H)
    b_g = gate_cols((bih_f + bhh_f)[None, :], (bih_b + bhh_b)[None, :])
    gate_table = (jnp.dot(emb, wih_g, precision=lax.Precision.HIGHEST)
                  + b_g)                                          # (VOCAB, 8H) f32

    # Block-diagonal recurrent weight: rows [h_f(H) | h_b(H)], cols as above.
    whh_f_cols = gate_cols(whh_f.T, jnp.zeros_like(whh_b.T))      # (H, 8H)
    whh_b_cols = gate_cols(jnp.zeros_like(whh_f.T), whh_b.T)      # (H, 8H)
    whh_bd = jnp.concatenate([whh_f_cols, whh_b_cols], axis=0).astype(bf16)

    # Fused padded head (lane-dense 128-wide output).
    whead_pad = jnp.zeros((HEAD_PAD, FC), jnp.float32).at[:N_OUT].set(whead)
    bhead_pad = jnp.zeros((HEAD_PAD,), jnp.float32).at[:N_OUT].set(bhead)
    mask_pad = jnp.zeros((HEAD_PAD,), jnp.float32).at[:N_OUT].set(mask)

    fwd_col_mask = jnp.tile(
        jnp.concatenate([jnp.ones((H,), dtype=bool),
                         jnp.zeros((H,), dtype=bool)]), 4)        # (8H,)

    kparams = dict(
        gate_table=gate_table,                        # (VOCAB, 8H) f32
        fwd_col_mask=fwd_col_mask,                    # (8H,) bool
        whh_bd=whh_bd,                                # (2H, 8H) bf16
        wfc_t=wfc.T.astype(bf16),                     # (2H, FC) bf16
        b_fc=bfc[None, :],                            # (1, FC) f32
        whead_t=whead_pad.T.astype(bf16),             # (FC, 128) bf16
        b_head=bhead_pad[None, :],                    # (1, 128) f32
        sigmoid_mask=mask_pad[None, :],               # (1, 128) f32
    )
    return kparams, raw


# ------------------------------ pure-JAX reference ----------------------------
def reference_forward(tokens, raw):
    emb = jnp.take(raw["embedding"], tokens, axis=0)   # (B, T, E)
    bf16 = jnp.bfloat16

    def run(wih, whh, bih, bhh, reverse):
        h = jnp.zeros((B, H), jnp.float32)
        c = jnp.zeros((B, H), jnp.float32)
        acc = jnp.zeros((B, H), jnp.float32)
        order = range(T - 1, -1, -1) if reverse else range(T)
        for t in order:
            x_t = emb[:, t, :]
            gates = (jnp.dot(x_t, wih.T, precision=lax.Precision.HIGHEST)
                     + bih + bhh
                     + jnp.dot(h.astype(bf16), whh.T.astype(bf16),
                               preferred_element_type=jnp.float32))
            i = jax.nn.sigmoid(gates[:, 0:H])
            f = jax.nn.sigmoid(gates[:, H:2 * H])
            g = jnp.tanh(gates[:, 2 * H:3 * H])
            o = jax.nn.sigmoid(gates[:, 3 * H:4 * H])
            c = f * c + i * g
            h = o * jnp.tanh(c)
            acc = acc + h
        return acc / T

    mf = run(raw["wih_f"], raw["whh_f"], raw["bih_f"], raw["bhh_f"], False)
    mb = run(raw["wih_b"], raw["whh_b"], raw["bih_b"], raw["bhh_b"], True)
    mean = jnp.concatenate([mf, mb], axis=1)
    fc = jnp.maximum(
        jnp.dot(mean.astype(bf16), raw["wfc"].T.astype(bf16),
                preferred_element_type=jnp.float32) + raw["bfc"], 0.0)
    z = (jnp.dot(fc.astype(bf16), raw["whead"].T.astype(bf16),
                 preferred_element_type=jnp.float32) + raw["bhead"])
    return jnp.where(raw["mask"] > 0.5, jax.nn.sigmoid(z), z)


# ------------------------------------ main ------------------------------------
if __name__ == "__main__":
    key = jax.random.PRNGKey(0)
    pkey, tkey = jax.random.split(key)
    kparams, raw = init_params(pkey)
    tokens = jax.random.randint(tkey, (B, T), 0, VOCAB, dtype=jnp.int32)

    out = jax.block_until_ready(multi_output_forward(tokens, kparams))
    ref = jax.block_until_ready(reference_forward(tokens, raw))

    assert out.shape == (B, N_OUT)
    max_err = float(jnp.max(jnp.abs(out - ref)))
    if max_err > 2e-3:
        raise AssertionError(f"mismatch vs reference: max_err={max_err}")
    print("KERNEL_OK")
</pallas_src>

<mosaic_0001>
module attributes {stable_mosaic.version = 11 : i64} {
  func.func @multi_output_kernel(%arg0: memref<8x2x256xf32, #tpu.memory_space<vmem>>, %arg1: memref<64x256xbf16, #tpu.memory_space<vmem>>, %arg2: memref<64x512xbf16, #tpu.memory_space<vmem>>, %arg3: memref<1x512xf32, #tpu.memory_space<vmem>>, %arg4: memref<512x128xbf16, #tpu.memory_space<vmem>>, %arg5: memref<1x128xf32, #tpu.memory_space<vmem>>, %arg6: memref<1x128xf32, #tpu.memory_space<vmem>>, %arg7: memref<2x128xf32, #tpu.memory_space<vmem>>) attributes {dimension_semantics = [], scalar_prefetch = 0 : i64, scratch_operands = 0 : i64, tpu.core_type = #tpu.core_type<tc>} {
    %c0 = arith.constant 0 : index
    %c0_0 = arith.constant 0 : index
    %0 = vector.load %arg1[%c0, %c0_0] : memref<64x256xbf16, #tpu.memory_space<vmem>>, vector<64x256xbf16>
    %cst = arith.constant 0.000000e+00 : f32
    %1 = vector.broadcast %cst : f32 to vector<2x64xf32>
    %cst_1 = arith.constant 0.000000e+00 : f32
    %2 = vector.broadcast %cst_1 : f32 to vector<2x64xf32>
    %cst_2 = arith.constant 0.000000e+00 : f32
    %3 = vector.broadcast %cst_2 : f32 to vector<2x64xf32>
    %c0_3 = arith.constant 0 : index
    %c0_4 = arith.constant 0 : index
    %c0_5 = arith.constant 0 : index
    %4 = vector.load %arg0[%c0_3, %c0_4, %c0_5] : memref<8x2x256xf32, #tpu.memory_space<vmem>>, vector<1x2x256xf32>
    %5 = vector.shape_cast %4 : vector<1x2x256xf32> to vector<2x256xf32>
    %6 = arith.truncf %1 : vector<2x64xf32> to vector<2x64xbf16>
    %cst_6 = arith.constant dense<0.000000e+00> : vector<2x256xf32>
    %7 = tpu.matmul %6, %0, %cst_6 {dimension_numbers = #tpu.dot_dimension_numbers<[1], [0], [0], [1], [0, 0, 1, 1], [], []>} : vector<2x64xbf16>, vector<64x256xbf16>, vector<2x256xf32> -> vector<2x256xf32>
    %8 = arith.addf %5, %7 : vector<2x256xf32>
    %9 = vector.extract_strided_slice %8 {offsets = [0, 0], sizes = [2, 192], strides = [1, 1]} : vector<2x256xf32> to vector<2x192xf32>
    %cst_7 = arith.constant 5.000000e-01 : f32
    %10 = vector.broadcast %cst_7 : f32 to vector<2x192xf32>
    %11 = arith.mulf %10, %9 : vector<2x192xf32>
    %12 = math.tanh %11 : vector<2x192xf32>
    %cst_8 = arith.constant 5.000000e-01 : f32
    %13 = vector.broadcast %cst_8 : f32 to vector<2x192xf32>
    %14 = arith.mulf %13, %12 : vector<2x192xf32>
    %cst_9 = arith.constant 5.000000e-01 : f32
    %15 = vector.broadcast %cst_9 : f32 to vector<2x192xf32>
    %16 = arith.addf %14, %15 : vector<2x192xf32>
    %17 = vector.extract_strided_slice %8 {offsets = [0, 192], sizes = [2, 64], strides = [1, 1]} : vector<2x256xf32> to vector<2x64xf32>
    %18 = math.tanh %17 : vector<2x64xf32>
    %19 = vector.extract_strided_slice %16 {offsets = [0, 0], sizes = [2, 64], strides = [1, 1]} : vector<2x192xf32> to vector<2x64xf32>
    %20 = vector.extract_strided_slice %16 {offsets = [0, 64], sizes = [2, 64], strides = [1, 1]} : vector<2x192xf32> to vector<2x64xf32>
    %21 = vector.extract_strided_slice %16 {offsets = [0, 128], sizes = [2, 64], strides = [1, 1]} : vector<2x192xf32> to vector<2x64xf32>
    %22 = arith.mulf %20, %2 : vector<2x64xf32>
    %23 = arith.mulf %19, %18 : vector<2x64xf32>
    %24 = arith.addf %22, %23 : vector<2x64xf32>
    %25 = math.tanh %24 : vector<2x64xf32>
    %26 = arith.mulf %21, %25 : vector<2x64xf32>
    %27 = arith.addf %3, %26 : vector<2x64xf32>
    %c1 = arith.constant 1 : index
    %c0_10 = arith.constant 0 : index
    %c0_11 = arith.constant 0 : index
    %28 = vector.load %arg0[%c1, %c0_10, %c0_11] : memref<8x2x256xf32, #tpu.memory_space<vmem>>, vector<1x2x256xf32>
    %29 = vector.shape_cast %28 : vector<1x2x256xf32> to vector<2x256xf32>
    %30 = arith.truncf %26 : vector<2x64xf32> to vector<2x64xbf16>
    %cst_12 = arith.constant dense<0.000000e+00> : vector<2x256xf32>
    %31 = tpu.matmul %30, %0, %cst_12 {dimension_numbers = #tpu.dot_dimension_numbers<[1], [0], [0], [1], [0, 0, 1, 1], [], []>} : vector<2x64xbf16>, vector<64x256xbf16>, vector<2x256xf32> -> vector<2x256xf32>
    %32 = arith.addf %29, %31 : vector<2x256xf32>
    %33 = vector.extract_strided_slice %32 {offsets = [0, 0], sizes = [2, 192], strides = [1, 1]} : vector<2x256xf32> to vector<2x192xf32>
    %cst_13 = arith.constant 5.000000e-01 : f32
    %34 = vector.broadcast %cst_13 : f32 to vector<2x192xf32>
    %35 = arith.mulf %34, %33 : vector<2x192xf32>
    %36 = math.tanh %35 : vector<2x192xf32>
    %cst_14 = arith.constant 5.000000e-01 : f32
    %37 = vector.broadcast %cst_14 : f32 to vector<2x192xf32>
    %38 = arith.mulf %37, %36 : vector<2x192xf32>
    %cst_15 = arith.constant 5.000000e-01 : f32
    %39 = vector.broadcast %cst_15 : f32 to vector<2x192xf32>
    %40 = arith.addf %38, %39 : vector<2x192xf32>
    %41 = vector.extract_strided_slice %32 {offsets = [0, 192], sizes = [2, 64], strides = [1, 1]} : vector<2x256xf32> to vector<2x64xf32>
    %42 = math.tanh %41 : vector<2x64xf32>
    %43 = vector.extract_strided_slice %40 {offsets = [0, 0], sizes = [2, 64], strides = [1, 1]} : vector<2x192xf32> to vector<2x64xf32>
    %44 = vector.extract_strided_slice %40 {offsets = [0, 64], sizes = [2, 64], strides = [1, 1]} : vector<2x192xf32> to vector<2x64xf32>
    %45 = vector.extract_strided_slice %40 {offsets = [0, 128], sizes = [2, 64], strides = [1, 1]} : vector<2x192xf32> to vector<2x64xf32>
    %46 = arith.mulf %44, %24 : vector<2x64xf32>
    %47 = arith.mulf %43, %42 : vector<2x64xf32>
    %48 = arith.addf %46, %47 : vector<2x64xf32>
    %49 = math.tanh %48 : vector<2x64xf32>
    %50 = arith.mulf %45, %49 : vector<2x64xf32>
    %51 = arith.addf %27, %50 : vector<2x64xf32>
    %c2 = arith.constant 2 : index
    %c0_16 = arith.constant 0 : index
    %c0_17 = arith.constant 0 : index
    %52 = vector.load %arg0[%c2, %c0_16, %c0_17] : memref<8x2x256xf32, #tpu.memory_space<vmem>>, vector<1x2x256xf32>
    %53 = vector.shape_cast %52 : vector<1x2x256xf32> to vector<2x256xf32>
    %54 = arith.truncf %50 : vector<2x64xf32> to vector<2x64xbf16>
    %cst_18 = arith.constant dense<0.000000e+00> : vector<2x256xf32>
    %55 = tpu.matmul %54, %0, %cst_18 {dimension_numbers = #tpu.dot_dimension_numbers<[1], [0], [0], [1], [0, 0, 1, 1], [], []>} : vector<2x64xbf16>, vector<64x256xbf16>, vector<2x256xf32> -> vector<2x256xf32>
    %56 = arith.addf %53, %55 : vector<2x256xf32>
    %57 = vector.extract_strided_slice %56 {offsets = [0, 0], sizes = [2, 192], strides = [1, 1]} : vector<2x256xf32> to vector<2x192xf32>
    %cst_19 = arith.constant 5.000000e-01 : f32
    %58 = vector.broadcast %cst_19 : f32 to vector<2x192xf32>
    %59 = arith.mulf %58, %57 : vector<2x192xf32>
    %60 = math.tanh %59 : vector<2x192xf32>
    %cst_20 = arith.constant 5.000000e-01 : f32
    %61 = vector.broadcast %cst_20 : f32 to vector<2x192xf32>
    %62 = arith.mulf %61, %60 : vector<2x192xf32>
    %cst_21 = arith.constant 5.000000e-01 : f32
    %63 = vector.broadcast %cst_21 : f32 to vector<2x192xf32>
    %64 = arith.addf %62, %63 : vector<2x192xf32>
    %65 = vector.extract_strided_slice %56 {offsets = [0, 192], sizes = [2, 64], strides = [1, 1]} : vector<2x256xf32> to vector<2x64xf32>
    %66 = math.tanh %65 : vector<2x64xf32>
    %67 = vector.extract_strided_slice %64 {offsets = [0, 0], sizes = [2, 64], strides = [1, 1]} : vector<2x192xf32> to vector<2x64xf32>
    %68 = vector.extract_strided_slice %64 {offsets = [0, 64], sizes = [2, 64], strides = [1, 1]} : vector<2x192xf32> to vector<2x64xf32>
    %69 = vector.extract_strided_slice %64 {offsets = [0, 128], sizes = [2, 64], strides = [1, 1]} : vector<2x192xf32> to vector<2x64xf32>
    %70 = arith.mulf %68, %48 : vector<2x64xf32>
    %71 = arith.mulf %67, %66 : vector<2x64xf32>
    %72 = arith.addf %70, %71 : vector<2x64xf32>
    %73 = math.tanh %72 : vector<2x64xf32>
    %74 = arith.mulf %69, %73 : vector<2x64xf32>
    %75 = arith.addf %51, %74 : vector<2x64xf32>
    %c3 = arith.constant 3 : index
    %c0_22 = arith.constant 0 : index
    %c0_23 = arith.constant 0 : index
    %76 = vector.load %arg0[%c3, %c0_22, %c0_23] : memref<8x2x256xf32, #tpu.memory_space<vmem>>, vector<1x2x256xf32>
    %77 = vector.shape_cast %76 : vector<1x2x256xf32> to vector<2x256xf32>
    %78 = arith.truncf %74 : vector<2x64xf32> to vector<2x64xbf16>
    %cst_24 = arith.constant dense<0.000000e+00> : vector<2x256xf32>
    %79 = tpu.matmul %78, %0, %cst_24 {dimension_numbers = #tpu.dot_dimension_numbers<[1], [0], [0], [1], [0, 0, 1, 1], [], []>} : vector<2x64xbf16>, vector<64x256xbf16>, vector<2x256xf32> -> vector<2x256xf32>
    %80 = arith.addf %77, %79 : vector<2x256xf32>
    %81 = vector.extract_strided_slice %80 {offsets = [0, 0], sizes = [2, 192], strides = [1, 1]} : vector<2x256xf32> to vector<2x192xf32>
    %cst_25 = arith.constant 5.000000e-01 : f32
    %82 = vector.broadcast %cst_25 : f32 to vector<2x192xf32>
    %83 = arith.mulf %82, %81 : vector<2x192xf32>
    %84 = math.tanh %83 : vector<2x192xf32>
    %cst_26 = arith.constant 5.000000e-01 : f32
    %85 = vector.broadcast %cst_26 : f32 to vector<2x192xf32>
    %86 = arith.mulf %85, %84 : vector<2x192xf32>
    %cst_27 = arith.constant 5.000000e-01 : f32
    %87 = vector.broadcast %cst_27 : f32 to vector<2x192xf32>
    %88 = arith.addf %86, %87 : vector<2x192xf32>
    %89 = vector.extract_strided_slice %80 {offsets = [0, 192], sizes = [2, 64], strides = [1, 1]} : vector<2x256xf32> to vector<2x64xf32>
    %90 = math.tanh %89 : vector<2x64xf32>
    %91 = vector.extract_strided_slice %88 {offsets = [0, 0], sizes = [2, 64], strides = [1, 1]} : vector<2x192xf32> to vector<2x64xf32>
    %92 = vector.extract_strided_slice %88 {offsets = [0, 64], sizes = [2, 64], strides = [1, 1]} : vector<2x192xf32> to vector<2x64xf32>
    %93 = vector.extract_strided_slice %88 {offsets = [0, 128], sizes = [2, 64], strides = [1, 1]} : vector<2x192xf32> to vector<2x64xf32>
    %94 = arith.mulf %92, %72 : vector<2x64xf32>
    %95 = arith.mulf %91, %90 : vector<2x64xf32>
    %96 = arith.addf %94, %95 : vector<2x64xf32>
    %97 = math.tanh %96 : vector<2x64xf32>
    %98 = arith.mulf %93, %97 : vector<2x64xf32>
    %99 = arith.addf %75, %98 : vector<2x64xf32>
    %c4 = arith.constant 4 : index
    %c0_28 = arith.constant 0 : index
    %c0_29 = arith.constant 0 : index
    %100 = vector.load %arg0[%c4, %c0_28, %c0_29] : memref<8x2x256xf32, #tpu.memory_space<vmem>>, vector<1x2x256xf32>
    %101 = vector.shape_cast %100 : vector<1x2x256xf32> to vector<2x256xf32>
    %102 = arith.truncf %98 : vector<2x64xf32> to vector<2x64xbf16>
    %cst_30 = arith.constant dense<0.000000e+00> : vector<2x256xf32>
    %103 = tpu.matmul %102, %0, %cst_30 {dimension_numbers = #tpu.dot_dimension_numbers<[1], [0], [0], [1], [0, 0, 1, 1], [], []>} : vector<2x64xbf16>, vector<64x256xbf16>, vector<2x256xf32> -> vector<2x256xf32>
    %104 = arith.addf %101, %103 : vector<2x256xf32>
    %105 = vector.extract_strided_slice %104 {offsets = [0, 0], sizes = [2, 192], strides = [1, 1]} : vector<2x256xf32> to vector<2x192xf32>
    %cst_31 = arith.constant 5.000000e-01 : f32
    %106 = vector.broadcast %cst_31 : f32 to vector<2x192xf32>
    %107 = arith.mulf %106, %105 : vector<2x192xf32>
    %108 = math.tanh %107 : vector<2x192xf32>
    %cst_32 = arith.constant 5.000000e-01 : f32
    %109 = vector.broadcast %cst_32 : f32 to vector<2x192xf32>
    %110 = arith.mulf %109, %108 : vector<2x192xf32>
    %cst_33 = arith.constant 5.000000e-01 : f32
    %111 = vector.broadcast %cst_33 : f32 to vector<2x192xf32>
    %112 = arith.addf %110, %111 : vector<2x192xf32>
    %113 = vector.extract_strided_slice %104 {offsets = [0, 192], sizes = [2, 64], strides = [1, 1]} : vector<2x256xf32> to vector<2x64xf32>
    %114 = math.tanh %113 : vector<2x64xf32>
    %115 = vector.extract_strided_slice %112 {offsets = [0, 0], sizes = [2, 64], strides = [1, 1]} : vector<2x192xf32> to vector<2x64xf32>
    %116 = vector.extract_strided_slice %112 {offsets = [0, 64], sizes = [2, 64], strides = [1, 1]} : vector<2x192xf32> to vector<2x64xf32>
    %117 = vector.extract_strided_slice %112 {offsets = [0, 128], sizes = [2, 64], strides = [1, 1]} : vector<2x192xf32> to vector<2x64xf32>
    %118 = arith.mulf %116, %96 : vector<2x64xf32>
    %119 = arith.mulf %115, %114 : vector<2x64xf32>
    %120 = arith.addf %118, %119 : vector<2x64xf32>
    %121 = math.tanh %120 : vector<2x64xf32>
    %122 = arith.mulf %117, %121 : vector<2x64xf32>
    %123 = arith.addf %99, %122 : vector<2x64xf32>
    %c5 = arith.constant 5 : index
    %c0_34 = arith.constant 0 : index
    %c0_35 = arith.constant 0 : index
    %124 = vector.load %arg0[%c5, %c0_34, %c0_35] : memref<8x2x256xf32, #tpu.memory_space<vmem>>, vector<1x2x256xf32>
    %125 = vector.shape_cast %124 : vector<1x2x256xf32> to vector<2x256xf32>
    %126 = arith.truncf %122 : vector<2x64xf32> to vector<2x64xbf16>
    %cst_36 = arith.constant dense<0.000000e+00> : vector<2x256xf32>
    %127 = tpu.matmul %126, %0, %cst_36 {dimension_numbers = #tpu.dot_dimension_numbers<[1], [0], [0], [1], [0, 0, 1, 1], [], []>} : vector<2x64xbf16>, vector<64x256xbf16>, vector<2x256xf32> -> vector<2x256xf32>
    %128 = arith.addf %125, %127 : vector<2x256xf32>
    %129 = vector.extract_strided_slice %128 {offsets = [0, 0], sizes = [2, 192], strides = [1, 1]} : vector<2x256xf32> to vector<2x192xf32>
    %cst_37 = arith.constant 5.000000e-01 : f32
    %130 = vector.broadcast %cst_37 : f32 to vector<2x192xf32>
    %131 = arith.mulf %130, %129 : vector<2x192xf32>
    %132 = math.tanh %131 : vector<2x192xf32>
    %cst_38 = arith.constant 5.000000e-01 : f32
    %133 = vector.broadcast %cst_38 : f32 to vector<2x192xf32>
    %134 = arith.mulf %133, %132 : vector<2x192xf32>
    %cst_39 = arith.constant 5.000000e-01 : f32
    %135 = vector.broadcast %cst_39 : f32 to vector<2x192xf32>
    %136 = arith.addf %134, %135 : vector<2x192xf32>
    %137 = vector.extract_strided_slice %128 {offsets = [0, 192], sizes = [2, 64], strides = [1, 1]} : vector<2x256xf32> to vector<2x64xf32>
    %138 = math.tanh %137 : vector<2x64xf32>
    %139 = vector.extract_strided_slice %136 {offsets = [0, 0], sizes = [2, 64], strides = [1, 1]} : vector<2x192xf32> to vector<2x64xf32>
    %140 = vector.extract_strided_slice %136 {offsets = [0, 64], sizes = [2, 64], strides = [1, 1]} : vector<2x192xf32> to vector<2x64xf32>
    %141 = vector.extract_strided_slice %136 {offsets = [0, 128], sizes = [2, 64], strides = [1, 1]} : vector<2x192xf32> to vector<2x64xf32>
    %142 = arith.mulf %140, %120 : vector<2x64xf32>
    %143 = arith.mulf %139, %138 : vector<2x64xf32>
    %144 = arith.addf %142, %143 : vector<2x64xf32>
    %145 = math.tanh %144 : vector<2x64xf32>
    %146 = arith.mulf %141, %145 : vector<2x64xf32>
    %147 = arith.addf %123, %146 : vector<2x64xf32>
    %c6 = arith.constant 6 : index
    %c0_40 = arith.constant 0 : index
    %c0_41 = arith.constant 0 : index
    %148 = vector.load %arg0[%c6, %c0_40, %c0_41] : memref<8x2x256xf32, #tpu.memory_space<vmem>>, vector<1x2x256xf32>
    %149 = vector.shape_cast %148 : vector<1x2x256xf32> to vector<2x256xf32>
    %150 = arith.truncf %146 : vector<2x64xf32> to vector<2x64xbf16>
    %cst_42 = arith.constant dense<0.000000e+00> : vector<2x256xf32>
    %151 = tpu.matmul %150, %0, %cst_42 {dimension_numbers = #tpu.dot_dimension_numbers<[1], [0], [0], [1], [0, 0, 1, 1], [], []>} : vector<2x64xbf16>, vector<64x256xbf16>, vector<2x256xf32> -> vector<2x256xf32>
    %152 = arith.addf %149, %151 : vector<2x256xf32>
    %153 = vector.extract_strided_slice %152 {offsets = [0, 0], sizes = [2, 192], strides = [1, 1]} : vector<2x256xf32> to vector<2x192xf32>
    %cst_43 = arith.constant 5.000000e-01 : f32
    %154 = vector.broadcast %cst_43 : f32 to vector<2x192xf32>
    %155 = arith.mulf %154, %153 : vector<2x192xf32>
    %156 = math.tanh %155 : vector<2x192xf32>
    %cst_44 = arith.constant 5.000000e-01 : f32
    %157 = vector.broadcast %cst_44 : f32 to vector<2x192xf32>
    %158 = arith.mulf %157, %156 : vector<2x192xf32>
    %cst_45 = arith.constant 5.000000e-01 : f32
    %159 = vector.broadcast %cst_45 : f32 to vector<2x192xf32>
    %160 = arith.addf %158, %159 : vector<2x192xf32>
    %161 = vector.extract_strided_slice %152 {offsets = [0, 192], sizes = [2, 64], strides = [1, 1]} : vector<2x256xf32> to vector<2x64xf32>
    %162 = math.tanh %161 : vector<2x64xf32>
    %163 = vector.extract_strided_slice %160 {offsets = [0, 0], sizes = [2, 64], strides = [1, 1]} : vector<2x192xf32> to vector<2x64xf32>
    %164 = vector.extract_strided_slice %160 {offsets = [0, 64], sizes = [2, 64], strides = [1, 1]} : vector<2x192xf32> to vector<2x64xf32>
    %165 = vector.extract_strided_slice %160 {offsets = [0, 128], sizes = [2, 64], strides = [1, 1]} : vector<2x192xf32> to vector<2x64xf32>
    %166 = arith.mulf %164, %144 : vector<2x64xf32>
    %167 = arith.mulf %163, %162 : vector<2x64xf32>
    %168 = arith.addf %166, %167 : vector<2x64xf32>
    %169 = math.tanh %168 : vector<2x64xf32>
    %170 = arith.mulf %165, %169 : vector<2x64xf32>
    %171 = arith.addf %147, %170 : vector<2x64xf32>
    %c7 = arith.constant 7 : index
    %c0_46 = arith.constant 0 : index
    %c0_47 = arith.constant 0 : index
    %172 = vector.load %arg0[%c7, %c0_46, %c0_47] : memref<8x2x256xf32, #tpu.memory_space<vmem>>, vector<1x2x256xf32>
    %173 = vector.shape_cast %172 : vector<1x2x256xf32> to vector<2x256xf32>
    %174 = arith.truncf %170 : vector<2x64xf32> to vector<2x64xbf16>
    %cst_48 = arith.constant dense<0.000000e+00> : vector<2x256xf32>
    %175 = tpu.matmul %174, %0, %cst_48 {dimension_numbers = #tpu.dot_dimension_numbers<[1], [0], [0], [1], [0, 0, 1, 1], [], []>} : vector<2x64xbf16>, vector<64x256xbf16>, vector<2x256xf32> -> vector<2x256xf32>
    %176 = arith.addf %173, %175 : vector<2x256xf32>
    %177 = vector.extract_strided_slice %176 {offsets = [0, 0], sizes = [2, 192], strides = [1, 1]} : vector<2x256xf32> to vector<2x192xf32>
    %cst_49 = arith.constant 5.000000e-01 : f32
    %178 = vector.broadcast %cst_49 : f32 to vector<2x192xf32>
    %179 = arith.mulf %178, %177 : vector<2x192xf32>
    %180 = math.tanh %179 : vector<2x192xf32>
    %cst_50 = arith.constant 5.000000e-01 : f32
    %181 = vector.broadcast %cst_50 : f32 to vector<2x192xf32>
    %182 = arith.mulf %181, %180 : vector<2x192xf32>
    %cst_51 = arith.constant 5.000000e-01 : f32
    %183 = vector.broadcast %cst_51 : f32 to vector<2x192xf32>
    %184 = arith.addf %182, %183 : vector<2x192xf32>
    %185 = vector.extract_strided_slice %176 {offsets = [0, 192], sizes = [2, 64], strides = [1, 1]} : vector<2x256xf32> to vector<2x64xf32>
    %186 = math.tanh %185 : vector<2x64xf32>
    %187 = vector.extract_strided_slice %184 {offsets = [0, 0], sizes = [2, 64], strides = [1, 1]} : vector<2x192xf32> to vector<2x64xf32>
    %188 = vector.extract_strided_slice %184 {offsets = [0, 64], sizes = [2, 64], strides = [1, 1]} : vector<2x192xf32> to vector<2x64xf32>
    %189 = vector.extract_strided_slice %184 {offsets = [0, 128], sizes = [2, 64], strides = [1, 1]} : vector<2x192xf32> to vector<2x64xf32>
    %190 = arith.mulf %188, %168 : vector<2x64xf32>
    %191 = arith.mulf %187, %186 : vector<2x64xf32>
    %192 = arith.addf %190, %191 : vector<2x64xf32>
    %193 = math.tanh %192 : vector<2x64xf32>
    %194 = arith.mulf %189, %193 : vector<2x64xf32>
    %195 = arith.addf %171, %194 : vector<2x64xf32>
    %cst_52 = arith.constant 1.250000e-01 : f32
    %196 = vector.broadcast %cst_52 : f32 to vector<2x64xf32>
    %197 = arith.mulf %195, %196 : vector<2x64xf32>
    %198 = arith.truncf %197 : vector<2x64xf32> to vector<2x64xbf16>
    %c0_53 = arith.constant 0 : index
    %c0_54 = arith.constant 0 : index
    %199 = vector.load %arg2[%c0_53, %c0_54] : memref<64x512xbf16, #tpu.memory_space<vmem>>, vector<64x512xbf16>
    %cst_55 = arith.constant dense<0.000000e+00> : vector<2x512xf32>
    %200 = tpu.matmul %198, %199, %cst_55 {dimension_numbers = #tpu.dot_dimension_numbers<[1], [0], [0], [1], [0, 0, 1, 1], [], []>} : vector<2x64xbf16>, vector<64x512xbf16>, vector<2x512xf32> -> vector<2x512xf32>
    %c0_56 = arith.constant 0 : index
    %c0_57 = arith.constant 0 : index
    %201 = vector.load %arg3[%c0_56, %c0_57] : memref<1x512xf32, #tpu.memory_space<vmem>>, vector<1x512xf32>
    %202 = vector.broadcast %201 : vector<1x512xf32> to vector<2x512xf32>
    %203 = arith.addf %200, %202 : vector<2x512xf32>
    %cst_58 = arith.constant 0.000000e+00 : f32
    %204 = vector.broadcast %cst_58 : f32 to vector<2x512xf32>
    %205 = arith.maximumf %203, %204 : vector<2x512xf32>
    %206 = arith.truncf %205 : vector<2x512xf32> to vector<2x512xbf16>
    %c0_59 = arith.constant 0 : index
    %c0_60 = arith.constant 0 : index
    %207 = vector.load %arg4[%c0_59, %c0_60] : memref<512x128xbf16, #tpu.memory_space<vmem>>, vector<512x128xbf16>
    %cst_61 = arith.constant dense<0.000000e+00> : vector<2x128xf32>
    %208 = tpu.matmul %206, %207, %cst_61 {dimension_numbers = #tpu.dot_dimension_numbers<[1], [0], [0], [1], [0, 0, 1, 1], [], []>} : vector<2x512xbf16>, vector<512x128xbf16>, vector<2x128xf32> -> vector<2x128xf32>
    %c0_62 = arith.constant 0 : index
    %c0_63 = arith.constant 0 : index
    %209 = vector.load %arg5[%c0_62, %c0_63] : memref<1x128xf32, #tpu.memory_space<vmem>>, vector<1x128xf32>
    %210 = vector.broadcast %209 : vector<1x128xf32> to vector<2x128xf32>
    %211 = arith.addf %208, %210 : vector<2x128xf32>
    %c0_64 = arith.constant 0 : index
    %c0_65 = arith.constant 0 : index
    %212 = vector.load %arg6[%c0_64, %c0_65] : memref<1x128xf32, #tpu.memory_space<vmem>>, vector<1x128xf32>
    %cst_66 = arith.constant 5.000000e-01 : f32
    %213 = vector.broadcast %cst_66 : f32 to vector<1x128xf32>
    %214 = arith.cmpf ogt, %212, %213 : vector<1x128xf32>
    %215 = arith.negf %211 : vector<2x128xf32>
    %216 = math.exp %215 : vector<2x128xf32>
    %cst_67 = arith.constant 1.000000e+00 : f32
    %217 = vector.broadcast %cst_67 : f32 to vector<2x128xf32>
    %218 = arith.addf %217, %216 : vector<2x128xf32>
    %219 = arith.divf %217, %218 : vector<2x128xf32>
    %220 = vector.shape_cast %214 : vector<1x128xi1> to vector<1x128xi1>
    %221 = vector.broadcast %220 : vector<1x128xi1> to vector<2x128xi1>
    %222 = arith.select %221, %219, %211 : vector<2x128xi1>, vector<2x128xf32>
    %c0_68 = arith.constant 0 : index
    %c0_69 = arith.constant 0 : index
    %223 = vector.load %arg7[%c0_68, %c0_69] : memref<2x128xf32, #tpu.memory_space<vmem>>, vector<2x128xf32>
    tpu.vector_store %arg7[%c0_68, %c0_69], %222 {strides = array<i32>} : memref<2x128xf32, #tpu.memory_space<vmem>>, vector<2x128xf32>,
    return
  }
}

</mosaic_0001>

<bundles_post_ra>
// kernel: tpu_custom_call.1
= control target key start
LH: loop header
LB: loop body
LE: loop exit
PB: predicated region body
PF: predicated region fallthrough
CT: control target
= control target key end

     0   :  { %12 = vsyncpa [#allocation3], 0  ;;  %s1948_s0 = inlined_call_operand.hbm [shape: f32[8,2,256], index: 0, kind: input, shape index: {}]   ;;  %s1949_s1 = inlined_call_operand.hbm [shape: bf16[64,256], index: 1, kind: input, shape index: {}]   ;;  %s1950_s2 = inlined_call_operand.hbm [shape: bf16[64,512], index: 2, kind: input, shape index: {}]   ;;  %s1951_s3 = inlined_call_operand.hbm [shape: f32[1,512], index: 3, kind: input, shape index: {}]   ;;  %s1952_s4 = inlined_call_operand.hbm [shape: bf16[512,128], index: 4, kind: input, shape index: {}]   ;;  %s1953_s5 = inlined_call_operand.vmem [shape: f32[1,128], index: 5, kind: input, shape index: {}]   ;;  %s1954_s6 = inlined_call_operand.vmem [shape: f32[1,128], index: 6, kind: input, shape index: {}]   ;;  %s1955_s7 = inlined_call_operand.hbm [shape: f32[2,128], index: 7, kind: output, shape index: {}]  }
   0x1   :  { %13 = vsyncpa [#allocation6], 0 }
   0x2   :  { %14 = vsyncpa [#allocation9], 0  ;;  %s33_s26 = sshll.u32 %s1949_s1, 4  ;;  %s34_s26 = int_to_ptr.hbm [resolvable:$true] %s33_s26 }
   0x3   :  { %15 = vsyncpa [#allocation4], 0  ;;  %s1717_s27 = smov [#allocation5]   ;;  %s60_s8 = sshll.u32 %s1951_s3, 4  ;;  %s61_s8 = int_to_ptr.hbm [resolvable:$true] %s60_s8 }
   0x4   :  { %s35_s28 = sshll.u32 %s1717_s27, 4  ;;  %s1718_s9 = smov 128   ;;  %s36_s28 = int_to_ptr.vmem [resolvable:$true] %s35_s28 }
   0x5   :  { %s1719_s10 = smov 8   ;;  %s1720_s11 = smov [#allocation8]  }
   0x6   :  { %41 = dma.hbm_to_vmem [thread:$0]  %s34_s26, 1024, %s36_s28, [#allocation6], %s1718_s9, %s1718_s9, %s1719_s10  }
   0x7   :  { %s62_s12 = sshll.u32 %s1720_s11, 4  ;;  %s20_s15 = sshll.u32 %s1948_s0, 4  ;;  %s63_s12 = int_to_ptr.vmem [resolvable:$true] %s62_s12  ;;  %s21_s15 = int_to_ptr.hbm [resolvable:$true] %s20_s15 }
   0x8   :  { %65 = dma.hbm_to_vmem [thread:$0]  %s61_s8, 64, %s63_s12, [#allocation9]  }
   0x9   :  { %s1721_s1 = smov [#allocation2]   ;;  %s46_s3 = sshll.u32 %s1950_s2, 4  ;;  %s47_s3 = int_to_ptr.hbm [resolvable:$true] %s46_s3 }
   0xa   :  { %s22_s16 = sshll.u32 %s1721_s1, 4  ;;  %s1722_s19 = smov 64   ;;  %s23_s16 = int_to_ptr.vmem [resolvable:$true] %s22_s16 }
   0xb   :  { %s1723_s20 = smov 4   ;;  %s1724_s21 = smov [#allocation7]  }
   0xc   :  { %28 = dma.hbm_to_vmem [thread:$0]  %s21_s15, 512, %s23_s16, [#allocation3], %s1722_s19, %s1722_s19, %s1723_s20  }
   0xd   :  { %s48_s22 = sshll.u32 %s1724_s21, 4  ;;  %s1725_s0 = smov 256   ;;  %s49_s22 = int_to_ptr.vmem [resolvable:$true] %s48_s22 }
   0xe   :  { %s1726_s23 = smov 16   ;;  %s70_s26 = sshll.u32 %s1952_s4, 4  ;;  %s71_s26 = int_to_ptr.hbm [resolvable:$true] %s70_s26 }
   0xf   :  { %54 = dma.hbm_to_vmem [thread:$0]  %s47_s3, 2048, %s49_s22, [#allocation6], %s1725_s0, %s1725_s0, %s1726_s23  }
  0x10   :  { %s1727_s27 = smov [#allocation10]  }
  0x11   :  { %s72_s28 = sshll.u32 %s1727_s27, 4  ;;  %s73_s28 = int_to_ptr.vmem [resolvable:$true] %s72_s28 }
  0x12   :  { %78 = dma.hbm_to_vmem [thread:$0]  %s71_s26, 4096, %s73_s28, [#allocation9], %s1722_s19, %s1722_s19, %s1723_s20  }
  0x13   :  { %1709 = dma.done.wait [#allocation3], 512  }
  0x14   :  { %1710 = vsyncadd [#allocation3], 4294966784 }
  0x15   :  { %1711 = dma.done.wait [#allocation6], 3072  }
  0x16   :  { %1712 = vsyncadd [#allocation6], 4294964224 }
  0x17   :  { %1713 = dma.done.wait [#allocation9], 4160  }
  0x18   :  { %1714 = vsyncadd [#allocation9], 4294963136  ;;  %v1226_v0 = vld [vmem:[#allocation5 + $0x30] sm:$0xf]  ;;  %v1450_v1 = vld [vmem:[#allocation5 + $0x34] sm:$0xf0] }
  0x19   :  { %v1449_v2 = vld [vmem:[#allocation5 + $0x34] sm:$0xf]  ;;  %v1789_v3 = vor.u32 %v1450_v1, %v1226_v0  ;;  %v1228_v4 = vld [vmem:[#allocation5 + $0x38] sm:$0xf0]  ;;  %v1218_v5 = vld [vmem:[#allocation5 + $0x20] sm:$0xf] }
  0x1a   :  { %v1448_v6 = vld [vmem:[#allocation5 + $0x24] sm:$0xf0]  ;;  %v1791_v7 = vor.u32 %v1449_v2, %v1228_v4  ;;  %v1447_v8 = vld [vmem:[#allocation5 + $0x24] sm:$0xf]  ;;  %v1220_v9 = vld [vmem:[#allocation5 + $0x28] sm:$0xf0] }
  0x1b   :  { %161 = vmatpush.bf16.msra.mxu0 %v1789_v3  ;;  %v1794_v10 = vor.u32 %v1448_v6, %v1218_v5  ;;  %227 = vmatpush.bf16.msra.mxu2 %v1789_v3  ;;  %v1798_v11 = vor.u32 %v1447_v8, %v1220_v9  ;;  %v1210_v12 = vld [vmem:[#allocation5 + $0x10] sm:$0xf]  ;;  %v1446_v13 = vld [vmem:[#allocation5 + $0x14] sm:$0xf0]  ;;  %v1445_v14 = vld [vmem:[#allocation5 + $0x14] sm:$0xf] }
  0x1c   :  { %174 = vmatpush.bf16.msra.mxu1 %v1791_v7  ;;  %240 = vmatpush.bf16.msra.mxu3 %v1791_v7  ;;  %v1212_v15 = vld [vmem:[#allocation5 + $0x18] sm:$0xf0]  ;;  %v1802_v16 = vor.u32 %v1446_v13, %v1210_v12  ;;  %v1202_v18 = vld [vmem:[#allocation5] sm:$0xf]  ;;  %v1444_v19 = vld [vmem:[#allocation5 + $0x4] sm:$0xf0] }
  0x1d   :  { %v1806_v17 = vor.u32 %v1445_v14, %v1212_v15  ;;  %v1443_v20 = vld [vmem:[#allocation5 + $0x4] sm:$0xf]  ;;  %v1204_v21 = vld [vmem:[#allocation5 + $0x8] sm:$0xf0]  ;;  %v1810_v22 = vor.u32 %v1444_v19, %v1202_v18  ;;  %v1728_v24 = vmov 0   ;;  %vm186_vm0 = vcmask 1041408  }
  0x1e   :  { %v1814_v23 = vor.u32 %v1443_v20, %v1204_v21  ;;  %v112_v28 = vld [vmem:[#allocation2] sm:$0xf]  ;;  %vm153_vm1 = vcmask 523264   ;;  %v218_v52 = vld [vmem:[#allocation2 + $0x4] sm:$0xf]  ;;  %s1188_s11 = sshll.u32 %s1955_s7, 4  ;;  %s1189_s11 = int_to_ptr.hbm [resolvable:$true] %s1188_s11 }
  0x1f   :  { %162 = vmatpush.bf16.msra.mxu0 %v1794_v10  ;;  %228 = vmatpush.bf16.msra.mxu2 %v1794_v10  ;;  %v283_v18 = vld [vmem:[#allocation2 + $0x8] sm:$0xf] }
  0x20   :  { %175 = vmatpush.bf16.msra.mxu1 %v1798_v11  ;;  %241 = vmatpush.bf16.msra.mxu3 %v1798_v11 }
  0x23   :  { %163 = vmatpush.bf16.msra.mxu0 %v1802_v16  ;;  %229 = vmatpush.bf16.msra.mxu2 %v1802_v16 }
  0x24   :  { %176 = vmatpush.bf16.msra.mxu1 %v1806_v17  ;;  %242 = vmatpush.bf16.msra.mxu3 %v1806_v17 }
  0x27   :  { %164 = vmatpush.bf16.msra.mxu0 %v1810_v22  ;;  %230 = vmatpush.bf16.msra.mxu2 %v1810_v22 }
  0x28   :  { %177 = vmatpush.bf16.msra.mxu1 %v1814_v23  ;;  %243 = vmatpush.bf16.msra.mxu3 %v1814_v23 }
  0x2a   :  { %165 = vmatmul.bf16.vlgmr.msra.gmra.mxu0 %v1728_v24 }
  0x2b   :  { %292 = vmatpush.bf16.msrb.mxu0 %v1789_v3  ;;  %178 = vmatmul.bf16.vlgmr.msra.gmra.mxu1 %v1728_v24 }
  0x2c   :  { %305 = vmatpush.bf16.msrb.mxu1 %v1791_v7  ;;  %370 = vmatpush.bf16.msrb.mxu3 %v1791_v7 }
  0x2d   :  { %357 = vmatpush.bf16.msrb.mxu2 %v1789_v3 }
  0x2f   :  { %293 = vmatpush.bf16.msrb.mxu0 %v1794_v10 }
  0x30   :  { %306 = vmatpush.bf16.msrb.mxu1 %v1798_v11  ;;  %371 = vmatpush.bf16.msrb.mxu3 %v1798_v11 }
  0x31   :  { %358 = vmatpush.bf16.msrb.mxu2 %v1794_v10 }
  0x33   :  { %294 = vmatpush.bf16.msrb.mxu0 %v1802_v16 }
  0x34   :  { %307 = vmatpush.bf16.msrb.mxu1 %v1806_v17  ;;  %372 = vmatpush.bf16.msrb.mxu3 %v1806_v17 }
  0x35   :  { %359 = vmatpush.bf16.msrb.mxu2 %v1802_v16 }
  0x37   :  { %295 = vmatpush.bf16.msrb.mxu0 %v1810_v22 }
  0x38   :  { %308 = vmatpush.bf16.msrb.mxu1 %v1814_v23  ;;  %373 = vmatpush.bf16.msrb.mxu3 %v1814_v23 }
  0x39   :  { %360 = vmatpush.bf16.msrb.mxu2 %v1810_v22 }
  0x3b   :  { %422 = vmatpush.bf16.msra.mxu0 %v1789_v3 }
  0x3c   :  { %435 = vmatpush.bf16.msra.mxu1 %v1791_v7 }
  0x3f   :  { %423 = vmatpush.bf16.msra.mxu0 %v1794_v10 }
  0x40   :  { %436 = vmatpush.bf16.msra.mxu1 %v1798_v11 }
  0x43   :  { %424 = vmatpush.bf16.msra.mxu0 %v1802_v16 }
  0x44   :  { %437 = vmatpush.bf16.msra.mxu1 %v1806_v17 }
  0x47   :  { %425 = vmatpush.bf16.msra.mxu0 %v1810_v22 }
  0x48   :  { %438 = vmatpush.bf16.msra.mxu1 %v1814_v23 }
  0xa7   :  { %v166_v25 = vpop.f32.mrf.mxu0 }
  0xa8   :  { %v179_v26 = vpop.f32.mrf.mxu1 }
  0xa9   :  { %v185_v27 = vrot.slane %v179_v26, 6 }
  0xab   :  { %v187_v29 = vsel %vm186_vm0, %v166_v25, %v185_v27 }
  0xac   :  { %v189_v30 = vadd.f32 %v187_v29, %v112_v28 }
  0xae   :  { %195 = vrot.lane.b32.xlu0 %v189_v30, %s1722_s19  ;;  %v190_v33 = vmul.f32 0.5, %v189_v30 }
  0xaf   :  { %v168_v31 = vpop.f32.mrf.mxu0 }
  0xb0   :  { %v181_v32 = vpop.f32.mrf.mxu1  ;;  %1513 = vtanh.f32 %v190_v33 }
  0xb6   :  { %v1514_v35 = vpop.eup %1513 }
  0xb7   :  { %v192_v37 = vmul.f32 0.5, %v1514_v35 }
  0xb9   :  { %v193_v38 = vadd.f32 0.5, %v192_v37 }
  0xbb   :  { %v200_v41 = vmul.f32 0.0, %v193_v38  ;;  %v209_v45 = vrot.slane %v193_v38, 2 }
 0x120   :  { %v196_v34 = vpop.permute.xlu0 %195 }
 0x121   :  { %v197_v36 = vrot.slane %v196_v34, 2 }
 0x123   :  { %1515 = vtanh.f32 %v197_v36 }
 0x129   :  { %v1516_v39 = vpop.eup %1515 }
 0x12a   :  { %v201_v40 = vmul.f32 %v1516_v39, %v193_v38 }
 0x12c   :  { %203 = vrot.lane.b32.xlu0 %v201_v40, %s1722_s19 }
 0x19e   :  { %v204_v42 = vpop.permute.xlu0 %203 }
 0x19f   :  { %v206_v43 = vadd.f32 %v204_v42, %v200_v41 }
 0x1a1   :  { %1517 = vtanh.f32 %v206_v43 }
 0x1a7   :  { %v1518_v44 = vpop.eup %1517 }
 0x1a8   :  { %212 = vrot.lane.b32.xlu1 %v1518_v44, %s1722_s19 }
 0x21a   :  { %v213_v46 = vpop.permute.xlu1 %212 }
 0x21b   :  { %v1851_v47 = vmul.f32 %v213_v46, %v209_v45 }
 0x21d   :  { %v219_v48 = vpack.c.bf16 %v1851_v47, %v1851_v47 }
 0x21f   :  { %1232 = vmatmul.msk.bf16.vlgmr.msra.gmra.mxu2 %vm153_vm1, %v219_v48  ;;  %1233 = vmatmul.msk.bf16.vlgmr.msra.gmra.mxu3 %vm153_vm1, %v219_v48 }
 0x220   :  { %500 = vmatpush.bf16.msra.mxu3 %v1791_v7  ;;  %487 = vmatpush.bf16.msra.mxu2 %v1789_v3 }
 0x224   :  { %501 = vmatpush.bf16.msra.mxu3 %v1798_v11  ;;  %488 = vmatpush.bf16.msra.mxu2 %v1794_v10 }
 0x228   :  { %502 = vmatpush.bf16.msra.mxu3 %v1806_v17  ;;  %489 = vmatpush.bf16.msra.mxu2 %v1802_v16 }
 0x22c   :  { %503 = vmatpush.bf16.msra.mxu3 %v1814_v23  ;;  %490 = vmatpush.bf16.msra.mxu2 %v1810_v22 }
 0x2a2   :  { %v232_v49 = vpop.f32.mrf.mxu2  ;;  %v245_v50 = vpop.f32.mrf.mxu3 }
 0x2a3   :  { %v251_v51 = vrot.slane %v245_v50, 6 }
 0x2a5   :  { %v252_v53 = vsel %vm186_vm0, %v232_v49, %v251_v51 }
 0x2a6   :  { %v254_v54 = vadd.f32 %v252_v53, %v218_v52 }
 0x2a8   :  { %260 = vrot.lane.b32.xlu1 %v254_v54, %s1722_s19  ;;  %v255_v57 = vmul.f32 0.5, %v254_v54 }
 0x2aa   :  { %v234_v55 = vpop.f32.mrf.mxu2  ;;  %v247_v56 = vpop.f32.mrf.mxu3  ;;  %1519 = vtanh.f32 %v255_v57 }
 0x2b0   :  { %v1520_v59 = vpop.eup %1519 }
 0x2b1   :  { %v257_v61 = vmul.f32 0.5, %v1520_v59 }
 0x2b3   :  { %v258_v62 = vadd.f32 0.5, %v257_v61 }
 0x2b5   :  { %v265_v1 = vmul.f32 %v258_v62, %v206_v43  ;;  %v274_v6 = vrot.slane %v258_v62, 2 }
 0x31a   :  { %v261_v58 = vpop.permute.xlu1 %260 }
 0x31b   :  { %v262_v60 = vrot.slane %v261_v58, 2 }
 0x31d   :  { %1521 = vtanh.f32 %v262_v60 }
 0x323   :  { %v1522_v63 = vpop.eup %1521 }
 0x324   :  { %v266_v0 = vmul.f32 %v1522_v63, %v258_v62 }
 0x326   :  { %268 = vrot.lane.b32.xlu2 %v266_v0, %s1722_s19  ;;  %v413_v0 = vld [vmem:[#allocation2 + $0x10] sm:$0xf] }
 0x380   :  { %v269_v2 = vpop.permute.xlu2 %268 }
 0x381   :  { %v271_v4 = vadd.f32 %v269_v2, %v265_v1 }
 0x383   :  { %1523 = vtanh.f32 %v271_v4 }
 0x389   :  { %v1524_v5 = vpop.eup %1523 }
 0x38a   :  { %277 = vrot.lane.b32.xlu2 %v1524_v5, %s1722_s19 }
 0x3e4   :  { %v278_v8 = vpop.permute.xlu2 %277 }
 0x3e5   :  { %v280_v9 = vmul.f32 %v278_v8, %v274_v6 }
 0x3e7   :  { %v284_v12 = vpack.c.bf16 %v280_v9, %v280_v9  ;;  %v281_v40 = vadd.f32 %v280_v9, %v1851_v47  ;;  %v348_v47 = vld [vmem:[#allocation2 + $0xc] sm:$0xf] }
 0x3e9   :  { %1234 = vmatmul.msk.bf16.vlgmr.msrb.gmra.mxu0 %vm153_vm1, %v284_v12  ;;  %1235 = vmatmul.msk.bf16.vlgmr.msrb.gmra.mxu1 %vm153_vm1, %v284_v12 }
 0x3ea   :  { %565 = vmatpush.bf16.msrb.mxu1 %v1791_v7  ;;  %552 = vmatpush.bf16.msrb.mxu0 %v1789_v3 }
 0x3ee   :  { %566 = vmatpush.bf16.msrb.mxu1 %v1798_v11  ;;  %553 = vmatpush.bf16.msrb.mxu0 %v1794_v10 }
 0x3f2   :  { %567 = vmatpush.bf16.msrb.mxu1 %v1806_v17  ;;  %554 = vmatpush.bf16.msrb.mxu0 %v1802_v16 }
 0x3f6   :  { %568 = vmatpush.bf16.msrb.mxu1 %v1814_v23  ;;  %555 = vmatpush.bf16.msrb.mxu0 %v1810_v22 }
 0x466   :  { %v297_v13 = vpop.f32.mrf.mxu0  ;;  %v310_v14 = vpop.f32.mrf.mxu1 }
 0x467   :  { %v316_v15 = vrot.slane %v310_v14, 6 }
 0x469   :  { %v317_v19 = vsel %vm186_vm0, %v297_v13, %v316_v15 }
 0x46a   :  { %v319_v20 = vadd.f32 %v317_v19, %v283_v18 }
 0x46c   :  { %325 = vrot.lane.b32.xlu0 %v319_v20, %s1722_s19  ;;  %v320_v26 = vmul.f32 0.5, %v319_v20 }
 0x46e   :  { %v299_v21 = vpop.f32.mrf.mxu0  ;;  %v312_v25 = vpop.f32.mrf.mxu1  ;;  %1525 = vtanh.f32 %v320_v26 }
 0x474   :  { %v1526_v28 = vpop.eup %1525 }
 0x475   :  { %v322_v30 = vmul.f32 0.5, %v1526_v28 }
 0x477   :  { %v323_v31 = vadd.f32 0.5, %v322_v30 }
 0x479   :  { %v330_v34 = vmul.f32 %v323_v31, %v271_v4  ;;  %v339_v38 = vrot.slane %v323_v31, 2 }
 0x4de   :  { %v326_v27 = vpop.permute.xlu0 %325 }
 0x4df   :  { %v327_v29 = vrot.slane %v326_v27, 2 }
 0x4e1   :  { %1527 = vtanh.f32 %v327_v29 }
 0x4e7   :  { %v1528_v32 = vpop.eup %1527 }
 0x4e8   :  { %v331_v33 = vmul.f32 %v1528_v32, %v323_v31 }
 0x4ea   :  { %333 = vrot.lane.b32.xlu1 %v331_v33, %s1722_s19 }
 0x55c   :  { %v334_v35 = vpop.permute.xlu1 %333 }
 0x55d   :  { %v336_v36 = vadd.f32 %v334_v35, %v330_v34  ;;  %v478_v34 = vld [vmem:[#allocation2 + $0x14] sm:$0xf] }
 0x55f   :  { %1529 = vtanh.f32 %v336_v36 }
 0x565   :  { %v1530_v37 = vpop.eup %1529 }
 0x566   :  { %342 = vrot.lane.b32.xlu2 %v1530_v37, %s1722_s19 }
 0x5c0   :  { %v343_v39 = vpop.permute.xlu2 %342 }
 0x5c1   :  { %v345_v41 = vmul.f32 %v343_v39, %v339_v38 }
 0x5c3   :  { %v346_v42 = vadd.f32 %v345_v41, %v281_v40  ;;  %v349_v43 = vpack.c.bf16 %v345_v41, %v345_v41 }
 0x5c5   :  { %1236 = vmatmul.msk.bf16.vlgmr.msrb.gmra.mxu2 %vm153_vm1, %v349_v43  ;;  %1237 = vmatmul.msk.bf16.vlgmr.msrb.gmra.mxu3 %vm153_vm1, %v349_v43 }
 0x5c6   :  { %630 = vmatpush.bf16.msrb.mxu3 %v1791_v7  ;;  %617 = vmatpush.bf16.msrb.mxu2 %v1789_v3 }
 0x5ca   :  { %631 = vmatpush.bf16.msrb.mxu3 %v1798_v11  ;;  %618 = vmatpush.bf16.msrb.mxu2 %v1794_v10 }
 0x5ce   :  { %632 = vmatpush.bf16.msrb.mxu3 %v1806_v17  ;;  %619 = vmatpush.bf16.msrb.mxu2 %v1802_v16 }
 0x5d2   :  { %633 = vmatpush.bf16.msrb.mxu3 %v1814_v23  ;;  %620 = vmatpush.bf16.msrb.mxu2 %v1810_v22 }
 0x648   :  { %v362_v44 = vpop.f32.mrf.mxu2  ;;  %v375_v45 = vpop.f32.mrf.mxu3 }
 0x649   :  { %v381_v46 = vrot.slane %v375_v45, 6 }
 0x64b   :  { %v382_v7 = vsel %vm186_vm0, %v362_v44, %v381_v46 }
 0x64c   :  { %v384_v48 = vadd.f32 %v382_v7, %v348_v47 }
 0x64e   :  { %390 = vrot.lane.b32.xlu0 %v384_v48, %s1722_s19  ;;  %v385_v10 = vmul.f32 0.5, %v384_v48 }
 0x650   :  { %v364_v3 = vpop.f32.mrf.mxu2  ;;  %v377_v11 = vpop.f32.mrf.mxu3  ;;  %1531 = vtanh.f32 %v385_v10 }
 0x656   :  { %v1532_v49 = vpop.eup %1531 }
 0x657   :  { %v387_v23 = vmul.f32 0.5, %v1532_v49 }
 0x659   :  { %v388_v50 = vadd.f32 0.5, %v387_v23 }
 0x65b   :  { %v395_v52 = vmul.f32 %v388_v50, %v336_v36  ;;  %v404_v56 = vrot.slane %v388_v50, 2 }
 0x6c0   :  { %v391_v17 = vpop.permute.xlu0 %390 }
 0x6c1   :  { %v392_v16 = vrot.slane %v391_v17, 2 }
 0x6c3   :  { %1533 = vtanh.f32 %v392_v16 }
 0x6c9   :  { %v1534_v22 = vpop.eup %1533 }
 0x6ca   :  { %v396_v51 = vmul.f32 %v1534_v22, %v388_v50 }
 0x6cc   :  { %398 = vrot.lane.b32.xlu1 %v396_v51, %s1722_s19  ;;  %v543_v51 = vld [vmem:[#allocation2 + $0x18] sm:$0xf] }
 0x73e   :  { %v399_v53 = vpop.permute.xlu1 %398 }
 0x73f   :  { %v401_v54 = vadd.f32 %v399_v53, %v395_v52 }
 0x741   :  { %1535 = vtanh.f32 %v401_v54 }
 0x747   :  { %v1536_v55 = vpop.eup %1535 }
 0x748   :  { %407 = vrot.lane.b32.xlu2 %v1536_v55, %s1722_s19 }
 0x7a2   :  { %v408_v57 = vpop.permute.xlu2 %407 }
 0x7a3   :  { %v410_v58 = vmul.f32 %v408_v57, %v404_v56 }
 0x7a5   :  { %v411_v59 = vadd.f32 %v410_v58, %v346_v42  ;;  %v414_v60 = vpack.c.bf16 %v410_v58, %v410_v58 }
 0x7a7   :  { %1238 = vmatmul.msk.bf16.vlgmr.msra.gmra.mxu0 %vm153_vm1, %v414_v60  ;;  %1239 = vmatmul.msk.bf16.vlgmr.msra.gmra.mxu1 %vm153_vm1, %v414_v60 }
 0x824   :  { %v427_v61 = vpop.f32.mrf.mxu0  ;;  %v440_v62 = vpop.f32.mrf.mxu1 }
 0x825   :  { %v446_v63 = vrot.slane %v440_v62, 6 }
 0x827   :  { %v447_v1 = vsel %vm186_vm0, %v427_v61, %v446_v63 }
 0x828   :  { %v449_v2 = vadd.f32 %v447_v1, %v413_v0 }
 0x82a   :  { %455 = vrot.lane.b32.xlu0 %v449_v2, %s1722_s19  ;;  %v450_v6 = vmul.f32 0.5, %v449_v2 }
 0x82c   :  { %v429_v4 = vpop.f32.mrf.mxu0  ;;  %v442_v5 = vpop.f32.mrf.mxu1  ;;  %1537 = vtanh.f32 %v450_v6 }
 0x832   :  { %v1538_v9 = vpop.eup %1537 }
 0x833   :  { %v452_v13 = vmul.f32 0.5, %v1538_v9 }
 0x835   :  { %v453_v14 = vadd.f32 0.5, %v452_v13 }
 0x837   :  { %v460_v19 = vmul.f32 %v453_v14, %v401_v54  ;;  %v469_v26 = vrot.slane %v453_v14, 2 }
 0x89c   :  { %v456_v8 = vpop.permute.xlu0 %455 }
 0x89d   :  { %v457_v12 = vrot.slane %v456_v8, 2 }
 0x89f   :  { %1539 = vtanh.f32 %v457_v12 }
 0x8a5   :  { %v1540_v15 = vpop.eup %1539 }
 0x8a6   :  { %v461_v18 = vmul.f32 %v1540_v15, %v453_v14 }
 0x8a8   :  { %463 = vrot.lane.b32.xlu1 %v461_v18, %s1722_s19  ;;  %v608_v18 = vld [vmem:[#allocation2 + $0x1c] sm:$0xf] }
 0x91a   :  { %v464_v20 = vpop.permute.xlu1 %463 }
 0x91b   :  { %v466_v21 = vadd.f32 %v464_v20, %v460_v19 }
 0x91d   :  { %1541 = vtanh.f32 %v466_v21 }
 0x923   :  { %v1542_v25 = vpop.eup %1541 }
 0x924   :  { %472 = vrot.lane.b32.xlu2 %v1542_v25, %s1722_s19 }
 0x97e   :  { %v473_v27 = vpop.permute.xlu2 %472 }
 0x97f   :  { %v475_v28 = vmul.f32 %v473_v27, %v469_v26 }
 0x981   :  { %v476_v29 = vadd.f32 %v475_v28, %v411_v59  ;;  %v479_v30 = vpack.c.bf16 %v475_v28, %v475_v28 }
 0x983   :  { %1240 = vmatmul.msk.bf16.vlgmr.msra.gmra.mxu2 %vm153_vm1, %v479_v30  ;;  %1241 = vmatmul.msk.bf16.vlgmr.msra.gmra.mxu3 %vm153_vm1, %v479_v30 }
 0xa06   :  { %v492_v31 = vpop.f32.mrf.mxu2  ;;  %v505_v32 = vpop.f32.mrf.mxu3 }
 0xa07   :  { %v511_v33 = vrot.slane %v505_v32, 6 }
 0xa09   :  { %v512_v35 = vsel %vm186_vm0, %v492_v31, %v511_v33 }
 0xa0a   :  { %v514_v36 = vadd.f32 %v512_v35, %v478_v34  ;;  %v1304_v34 = vld [vmem:[#allocation7 + $0x68] sm:$0xf]  ;;  %v1466_v35 = vld [vmem:[#allocation7 + $0x74] sm:$0xf0] }
 0xa0c   :  { %520 = vrot.lane.b32.xlu0 %v514_v36, %s1722_s19  ;;  %v515_v39 = vmul.f32 0.5, %v514_v36  ;;  %v1296_v36 = vld [vmem:[#allocation7 + $0x60] sm:$0xf] }
 0xa0e   :  { %v494_v37 = vpop.f32.mrf.mxu2  ;;  %v507_v38 = vpop.f32.mrf.mxu3  ;;  %1543 = vtanh.f32 %v515_v39  ;;  %v1463_v39 = vld [vmem:[#allocation7 + $0x64] sm:$0xf] }
 0xa0f   :  { %v1305_v37 = vor.u32 %v1466_v35, %v1304_v34  ;;  %v1465_v38 = vld [vmem:[#allocation7 + $0x6c] sm:$0xf0] }
 0xa10   :  { %v1480_v34 = vld [vmem:[#allocation10 + $0x68] sm:$0xff] }
 0xa11   :  { %813 = vmatpush.bf16.msra.mxu2 %v1305_v37  ;;  %v1488_v35 = vld [vmem:[#allocation10 + $0xa8] sm:$0xff]  ;;  %v1471_v37 = vld [vmem:[#allocation10 + $0x20] sm:$0xff] }
 0xa14   :  { %v1544_v41 = vpop.eup %1543 }
 0xa15   :  { %v517_v43 = vmul.f32 0.5, %v1544_v41  ;;  %v1297_v41 = vor.u32 %v1465_v38, %v1296_v36  ;;  %v1496_v36 = vld [vmem:[#allocation10 + $0xe8] sm:$0xff]  ;;  %v1479_v38 = vld [vmem:[#allocation10 + $0x60] sm:$0xff] }
 0xa17   :  { %v518_v44 = vadd.f32 0.5, %v517_v43  ;;  %v1464_v43 = vld [vmem:[#allocation7 + $0x6c] sm:$0xf]  ;;  %787 = vmatpush.bf16.msra.mxu0 %v1297_v41  ;;  %v1470_v41 = vld [vmem:[#allocation10 + $0x18] sm:$0xff] }
 0xa19   :  { %v525_v47 = vmul.f32 %v518_v44, %v466_v21  ;;  %v534_v11 = vrot.slane %v518_v44, 2 }
 0xa7e   :  { %v521_v40 = vpop.permute.xlu0 %520 }
 0xa7f   :  { %v522_v42 = vrot.slane %v521_v40, 2  ;;  %v1298_v40 = vld [vmem:[#allocation7 + $0x70] sm:$0xf0] }
 0xa81   :  { %1545 = vtanh.f32 %v522_v42  ;;  %v1301_v42 = vor.u32 %v1463_v39, %v1298_v40  ;;  %v1487_v39 = vld [vmem:[#allocation10 + $0xa0] sm:$0xff] }
 0xa82   :  { %v1495_v40 = vld [vmem:[#allocation10 + $0xe0] sm:$0xff] }
 0xa83   :  { %800 = vmatpush.bf16.msra.mxu1 %v1301_v42  ;;  %v1478_v42 = vld [vmem:[#allocation10 + $0x58] sm:$0xff] }
 0xa87   :  { %v1546_v45 = vpop.eup %1545 }
 0xa88   :  { %v526_v46 = vmul.f32 %v1546_v45, %v518_v44  ;;  %v1306_v44 = vld [vmem:[#allocation7 + $0x78] sm:$0xf0]  ;;  %v1288_v45 = vld [vmem:[#allocation7 + $0x48] sm:$0xf] }
 0xa8a   :  { %528 = vrot.lane.b32.xlu1 %v526_v46, %s1722_s19  ;;  %v1309_v46 = vor.u32 %v1464_v43, %v1306_v44  ;;  %v1486_v43 = vld [vmem:[#allocation10 + $0x98] sm:$0xff] }
 0xa8b   :  { %v1494_v44 = vld [vmem:[#allocation10 + $0xd8] sm:$0xff] }
 0xa8c   :  { %826 = vmatpush.bf16.msra.mxu3 %v1309_v46  ;;  %v1477_v46 = vld [vmem:[#allocation10 + $0x50] sm:$0xff] }
 0xafc   :  { %v529_v7 = vpop.permute.xlu1 %528 }
 0xafd   :  { %v531_v48 = vadd.f32 %v529_v7, %v525_v47  ;;  %v1462_v47 = vld [vmem:[#allocation7 + $0x54] sm:$0xf0]  ;;  %v1280_v7 = vld [vmem:[#allocation7 + $0x40] sm:$0xf] }
 0xaff   :  { %1547 = vtanh.f32 %v531_v48 }
 0xb05   :  { %v1548_v3 = vpop.eup %1547 }
 0xb06   :  { %537 = vrot.lane.b32.xlu2 %v1548_v3, %s1722_s19  ;;  %v1289_v3 = vor.u32 %v1462_v47, %v1288_v45  ;;  %v1469_v45 = vld [vmem:[#allocation10 + $0x10] sm:$0xff] }
 0xb08   :  { %814 = vmatpush.bf16.msra.mxu2 %v1289_v3 }
 0xb60   :  { %v538_v10 = vpop.permute.xlu2 %537 }
 0xb61   :  { %v540_v17 = vmul.f32 %v538_v10, %v534_v11  ;;  %v1459_v10 = vld [vmem:[#allocation7 + $0x44] sm:$0xf] }
 0xb63   :  { %v541_v49 = vadd.f32 %v540_v17, %v476_v29  ;;  %v544_v16 = vpack.c.bf16 %v540_v17, %v540_v17  ;;  %v1282_v17 = vld [vmem:[#allocation7 + $0x50] sm:$0xf0] }
 0xb65   :  { %1242 = vmatmul.msk.bf16.vlgmr.msrb.gmra.mxu0 %vm153_vm1, %v544_v16  ;;  %1243 = vmatmul.msk.bf16.vlgmr.msrb.gmra.mxu1 %vm153_vm1, %v544_v16  ;;  %v1285_v16 = vor.u32 %v1459_v10, %v1282_v17  ;;  %v1468_v17 = vld [vmem:[#allocation10 + $0x8] sm:$0xff] }
 0xb67   :  { %801 = vmatpush.bf16.msra.mxu1 %v1285_v16  ;;  %v1493_v16 = vld [vmem:[#allocation10 + $0xd0] sm:$0xff] }
 0xbe2   :  { %v557_v23 = vpop.f32.mrf.mxu0  ;;  %v570_v50 = vpop.f32.mrf.mxu1 }
 0xbe3   :  { %v576_v22 = vrot.slane %v570_v50, 6 }
 0xbe5   :  { %v577_v52 = vsel %vm186_vm0, %v557_v23, %v576_v22  ;;  %v1290_v23 = vld [vmem:[#allocation7 + $0x58] sm:$0xf0] }
 0xbe6   :  { %v579_v53 = vadd.f32 %v577_v52, %v543_v51 }
 0xbe8   :  { %585 = vrot.lane.b32.xlu0 %v579_v53, %s1722_s19  ;;  %v580_v56 = vmul.f32 0.5, %v579_v53 }
 0xbea   :  { %v559_v54 = vpop.f32.mrf.mxu0  ;;  %v572_v55 = vpop.f32.mrf.mxu1  ;;  %1549 = vtanh.f32 %v580_v56  ;;  %v1264_v56 = vld [vmem:[#allocation7 + $0x20] sm:$0xf] }
 0xbeb   :  { %v1272_v54 = vld [vmem:[#allocation7 + $0x28] sm:$0xf]  ;;  %v1458_v55 = vld [vmem:[#allocation7 + $0x34] sm:$0xf0] }
 0xbf0   :  { %v1550_v58 = vpop.eup %1549 }
 0xbf1   :  { %v582_v60 = vmul.f32 0.5, %v1550_v58  ;;  %v1457_v58 = vld [vmem:[#allocation7 + $0x2c] sm:$0xf0] }
 0xbf3   :  { %v583_v61 = vadd.f32 0.5, %v582_v60  ;;  %v1266_v60 = vld [vmem:[#allocation7 + $0x30] sm:$0xf0] }
 0xbf5   :  { %v590_v0 = vmul.f32 %v583_v61, %v531_v48  ;;  %v599_v5 = vrot.slane %v583_v61, 2  ;;  %v1461_v48 = vld [vmem:[#allocation7 + $0x4c] sm:$0xf0] }
 0xbf6   :  { %v1281_v11 = vor.u32 %v1461_v48, %v1280_v7 }
 0xbf8   :  { %788 = vmatpush.bf16.msra.mxu0 %v1281_v11 }
 0xc5a   :  { %v586_v57 = vpop.permute.xlu0 %585 }
 0xc5b   :  { %v587_v59 = vrot.slane %v586_v57, 2  ;;  %v1273_v57 = vor.u32 %v1458_v55, %v1272_v54 }
 0xc5d   :  { %1551 = vtanh.f32 %v587_v59  ;;  %v1455_v59 = vld [vmem:[#allocation7 + $0x24] sm:$0xf]  ;;  %815 = vmatpush.bf16.msra.mxu2 %v1273_v57 }
 0xc63   :  { %v1552_v62 = vpop.eup %1551 }
 0xc64   :  { %v591_v63 = vmul.f32 %v1552_v62, %v583_v61  ;;  %v1265_v61 = vor.u32 %v1457_v58, %v1264_v56  ;;  %v1269_v62 = vor.u32 %v1455_v59, %v1266_v60 }
 0xc66   :  { %593 = vrot.lane.b32.xlu1 %v591_v63, %s1722_s19  ;;  %v1456_v63 = vld [vmem:[#allocation7 + $0x2c] sm:$0xf]  ;;  %789 = vmatpush.bf16.msra.mxu0 %v1265_v61 }
 0xc67   :  { %802 = vmatpush.bf16.msra.mxu1 %v1269_v62 }
 0xcd8   :  { %v594_v1 = vpop.permute.xlu1 %593 }
 0xcd9   :  { %v1915_v2 = vadd.f32 %v594_v1, %v590_v0  ;;  %v1274_v0 = vld [vmem:[#allocation7 + $0x38] sm:$0xf0] }
 0xcda   :  { %v1277_v1 = vor.u32 %v1456_v63, %v1274_v0 }
 0xcdb   :  { %1553 = vtanh.f32 %v1915_v2 }
 0xce1   :  { %v1554_v4 = vpop.eup %1553 }
 0xce2   :  { %602 = vrot.lane.b32.xlu2 %v1554_v4, %s1722_s19  ;;  %v1454_v4 = vld [vmem:[#allocation7 + $0x14] sm:$0xf0] }
 0xd3c   :  { %v603_v6 = vpop.permute.xlu2 %602 }
 0xd3d   :  { %v605_v8 = vmul.f32 %v603_v6, %v599_v5  ;;  %v1248_v5 = vld [vmem:[#allocation7] sm:$0xf] }
 0xd3f   :  { %v1919_v9 = vadd.f32 %v605_v8, %v541_v49  ;;  %v609_v12 = vpack.c.bf16 %v605_v8, %v605_v8  ;;  %v1460_v49 = vld [vmem:[#allocation7 + $0x4c] sm:$0xf]  ;;  %v1453_v8 = vld [vmem:[#allocation7 + $0xc] sm:$0xf0] }
 0xd40   :  { %v1293_v50 = vor.u32 %v1460_v49, %v1290_v23  ;;  %v1476_v49 = vld [vmem:[#allocation10 + $0x48] sm:$0xff]  ;;  %v1467_v23 = vld [vmem:[#allocation10] sm:$0xff] }
 0xd41   :  { %1244 = vmatmul.msk.bf16.vlgmr.msrb.gmra.mxu2 %vm153_vm1, %v609_v12  ;;  %1245 = vmatmul.msk.bf16.vlgmr.msrb.gmra.mxu3 %vm153_vm1, %v609_v12  ;;  %v1451_v12 = vld [vmem:[#allocation7 + $0x4] sm:$0xf] }
 0xd42   :  { %827 = vmatpush.bf16.msra.mxu3 %v1293_v50  ;;  %v1484_v50 = vld [vmem:[#allocation10 + $0x88] sm:$0xff] }
 0xd46   :  { %828 = vmatpush.bf16.msra.mxu3 %v1277_v1 }
 0xdc4   :  { %v622_v13 = vpop.f32.mrf.mxu2  ;;  %v635_v14 = vpop.f32.mrf.mxu3 }
 0xdc5   :  { %v641_v15 = vrot.slane %v635_v14, 6  ;;  %v1249_v14 = vor.u32 %v1453_v8, %v1248_v5 }
 0xdc7   :  { %v642_v19 = vsel %vm186_vm0, %v622_v13, %v641_v15  ;;  %v1250_v13 = vld [vmem:[#allocation7 + $0x10] sm:$0xf0]  ;;  %790 = vmatpush.bf16.msra.mxu0 %v1249_v14 }
 0xdc8   :  { %v644_v20 = vadd.f32 %v642_v19, %v608_v18  ;;  %v1253_v15 = vor.u32 %v1451_v12, %v1250_v13  ;;  %v1452_v18 = vld [vmem:[#allocation7 + $0xc] sm:$0xf]  ;;  %v1258_v19 = vld [vmem:[#allocation7 + $0x18] sm:$0xf0] }
 0xdca   :  { %650 = vrot.lane.b32.xlu0 %v644_v20, %s1722_s19  ;;  %v645_v26 = vmul.f32 0.5, %v644_v20  ;;  %v1261_v20 = vor.u32 %v1452_v18, %v1258_v19  ;;  %803 = vmatpush.bf16.msra.mxu1 %v1253_v15 }
 0xdcc   :  { %v624_v21 = vpop.f32.mrf.mxu2  ;;  %v637_v25 = vpop.f32.mrf.mxu3  ;;  %1555 = vtanh.f32 %v645_v26  ;;  %829 = vmatpush.bf16.msra.mxu3 %v1261_v20  ;;  %v1490_v26 = vld [vmem:[#allocation10 + $0xb8] sm:$0xff] }
 0xdcd   :  { %v1474_v21 = vld [vmem:[#allocation10 + $0x38] sm:$0xff] }
 0xdce   :  { %v1482_v25 = vld [vmem:[#allocation10 + $0x78] sm:$0xff]  ;;  %1103 = vmatpush.bf16.msrb.mxu0 %v1474_v21 }
 0xdcf   :  { %1116 = vmatpush.bf16.msrb.mxu1 %v1482_v25 }
 0xdd2   :  { %v1556_v28 = vpop.eup %1555 }
 0xdd3   :  { %v647_v30 = vmul.f32 0.5, %v1556_v28  ;;  %v1473_v28 = vld [vmem:[#allocation10 + $0x30] sm:$0xff] }
 0xdd4   :  { %1104 = vmatpush.bf16.msrb.mxu0 %v1473_v28 }
 0xdd5   :  { %v1925_v31 = vadd.f32 0.5, %v647_v30  ;;  %v1489_v30 = vld [vmem:[#allocation10 + $0xb0] sm:$0xff] }
 0xdd7   :  { %v655_v22 = vmul.f32 %v1925_v31, %v1915_v2  ;;  %v1256_v2 = vld [vmem:[#allocation7 + $0x8] sm:$0xf]  ;;  %v664_v47 = vrot.slane %v1925_v31, 2 }
 0xdd8   :  { %v1257_v6 = vor.u32 %v1454_v4, %v1256_v2 }
 0xdda   :  { %816 = vmatpush.bf16.msra.mxu2 %v1257_v6 }
 0xdde   :  { %1129 = vmatpush.bf16.msrb.mxu2 %v1490_v26  ;;  %v1512_v26 = vld [vmem:[%s1953_s5] ss:$0 sm:$0xff]  ;;  %s1729_s5 = smov [#allocation11]  }
 0xddf   :  { %s1186_s8 = sshll.u32 %s1729_s5, 4  ;;  %s1187_s8 = int_to_ptr.vmem [resolvable:$true] %s1186_s8 }
 0xde2   :  { %1130 = vmatpush.bf16.msrb.mxu2 %v1489_v30 }
 0xde6   :  { %1131 = vmatpush.bf16.msrb.mxu2 %v1488_v35 }
 0xdea   :  { %1132 = vmatpush.bf16.msrb.mxu2 %v1487_v39 }
 0xdee   :  { %1133 = vmatpush.bf16.msrb.mxu2 %v1486_v43 }
 0xe3c   :  { %v651_v27 = vpop.permute.xlu0 %650 }
 0xe3d   :  { %v652_v29 = vrot.slane %v651_v27, 2  ;;  %v1498_v27 = vld [vmem:[#allocation10 + $0xf8] sm:$0xff] }
 0xe3e   :  { %1142 = vmatpush.bf16.msrb.mxu3 %v1498_v27 }
 0xe3f   :  { %1557 = vtanh.f32 %v652_v29  ;;  %v1481_v29 = vld [vmem:[#allocation10 + $0x70] sm:$0xff] }
 0xe40   :  { %1117 = vmatpush.bf16.msrb.mxu1 %v1481_v29 }
 0xe44   :  { %1118 = vmatpush.bf16.msrb.mxu1 %v1480_v34 }
 0xe45   :  { %v1558_v32 = vpop.eup %1557 }
 0xe46   :  { %v656_v33 = vmul.f32 %v1558_v32, %v1925_v31  ;;  %v1497_v32 = vld [vmem:[#allocation10 + $0xf0] sm:$0xff] }
 0xe47   :  { %1143 = vmatpush.bf16.msrb.mxu3 %v1497_v32  ;;  %v1485_v31 = vld [vmem:[#allocation10 + $0x90] sm:$0xff] }
 0xe48   :  { %658 = vrot.lane.b32.xlu1 %v656_v33, %s1722_s19  ;;  %v1472_v33 = vld [vmem:[#allocation10 + $0x28] sm:$0xff]  ;;  %1119 = vmatpush.bf16.msrb.mxu1 %v1479_v38 }
 0xe49   :  { %1105 = vmatpush.bf16.msrb.mxu0 %v1472_v33  ;;  %1134 = vmatpush.bf16.msrb.mxu2 %v1485_v31 }
 0xe4b   :  { %1144 = vmatpush.bf16.msrb.mxu3 %v1496_v36 }
 0xe4c   :  { %1120 = vmatpush.bf16.msrb.mxu1 %v1478_v42 }
 0xe4d   :  { %1106 = vmatpush.bf16.msrb.mxu0 %v1471_v37  ;;  %1135 = vmatpush.bf16.msrb.mxu2 %v1484_v50 }
 0xe4f   :  { %1145 = vmatpush.bf16.msrb.mxu3 %v1495_v40 }
 0xe50   :  { %1121 = vmatpush.bf16.msrb.mxu1 %v1477_v46 }
 0xe51   :  { %1107 = vmatpush.bf16.msrb.mxu0 %v1470_v41  ;;  %v1155_v41 = vld [vmem:[%s1954_s6] sm:$0x1] }
 0xe52   :  { %vm1156_vm2 = vcmp.gt.f32.partialorder %v1155_v41, 0.5 }
 0xe53   :  { %1146 = vmatpush.bf16.msrb.mxu3 %v1494_v44  ;;  %v1176_v43 = vsel %vm1156_vm2, 1, %v1728_v24 }
 0xe54   :  { %1122 = vmatpush.bf16.msrb.mxu1 %v1476_v49  ;;  %v1177_v46 = vperm.slane %v1176_v43, 0 }
 0xe55   :  { %1108 = vmatpush.bf16.msrb.mxu0 %v1469_v45 }
 0xe56   :  { %vm1178_vm5 = vcmp.eq.s32.totalorder %v1177_v46, 1 }
 0xe57   :  { %1147 = vmatpush.bf16.msrb.mxu3 %v1493_v16 }
 0xe59   :  { %1109 = vmatpush.bf16.msrb.mxu0 %v1468_v17 }
 0xe5d   :  { %1110 = vmatpush.bf16.msrb.mxu0 %v1467_v23 }
 0xeba   :  { %v659_v51 = vpop.permute.xlu1 %658 }
 0xebb   :  { %v661_v52 = vadd.f32 %v659_v51, %v655_v22  ;;  %v1492_v22 = vld [vmem:[#allocation10 + $0xc8] sm:$0xff]  ;;  %v1483_v51 = vld [vmem:[#allocation10 + $0x80] sm:$0xff] }
 0xebc   :  { %1148 = vmatpush.bf16.msrb.mxu3 %v1492_v22  ;;  %1136 = vmatpush.bf16.msrb.mxu2 %v1483_v51 }
 0xebd   :  { %1559 = vtanh.f32 %v661_v52  ;;  %v1491_v52 = vld [vmem:[#allocation10 + $0xc0] sm:$0xff] }
 0xec0   :  { %1149 = vmatpush.bf16.msrb.mxu3 %v1491_v52 }
 0xec3   :  { %v1560_v53 = vpop.eup %1559 }
 0xec4   :  { %667 = vrot.lane.b32.xlu2 %v1560_v53, %s1722_s19  ;;  %v690_v53 = vld [vmem:[#allocation8] sm:$0xf] }
 0xec5   :  { %v692_v54 = vperm.slane %v690_v53, 0  ;;  %v693_v55 = vperm.slane %v690_v53, 1  ;;  %v694_v62 = vperm.slane %v690_v53, 2  ;;  %v695_v63 = vperm.slane %v690_v53, 3 }
 0xf1e   :  { %v668_v7 = vpop.permute.xlu2 %667 }
 0xf1f   :  { %v670_v48 = vmul.f32 %v668_v7, %v664_v47 }
 0xf21   :  { %v671_v3 = vadd.f32 %v670_v48, %v1919_v9  ;;  %v1475_v9 = vld [vmem:[#allocation10 + $0x40] sm:$0xff] }
 0xf22   :  { %1123 = vmatpush.bf16.msrb.mxu1 %v1475_v9 }
 0xf23   :  { %v672_v11 = vmul.f32 0.125, %v671_v3 }
 0xf25   :  { %v673_v10 = vpack.c.bf16 %v672_v11, %v672_v11 }
 0xf27   :  { %1310 = vmatmul.msk.bf16.vlgmr.msra.gmra.mxu0 %vm153_vm1, %v673_v10  ;;  %1311 = vmatmul.msk.bf16.vlgmr.msra.gmra.mxu1 %vm153_vm1, %v673_v10 }
 0xf28   :  { %1312 = vmatmul.msk.bf16.vlgmr.msra.gmra.mxu2 %vm153_vm1, %v673_v10  ;;  %1313 = vmatmul.msk.bf16.vlgmr.msra.gmra.mxu3 %vm153_vm1, %v673_v10 }
 0xfa4   :  { %v792_v56 = vpop.f32.mrf.mxu0  ;;  %v805_v57 = vpop.f32.mrf.mxu1 }
 0xfa5   :  { %v793_v58 = vadd.f32 %v792_v56, %v692_v54  ;;  %v806_v59 = vadd.f32 %v805_v57, %v693_v55 }
 0xfa7   :  { %v835_v60 = vmax.f32 %v793_v58, 0.0  ;;  %v836_v61 = vmax.f32 %v806_v59, 0.0 }
 0xfa9   :  { %v839_v0 = vpack.c.bf16 %v835_v60, %v835_v60  ;;  %v840_v1 = vpack.c.bf16 %v836_v61, %v836_v61 }
 0xfab   :  { %v818_v2 = vpop.f32.mrf.mxu2  ;;  %v831_v4 = vpop.f32.mrf.mxu3  ;;  %1111 = vmatmul.bf16.vlgmr.msrb.gmra.mxu0 %v839_v0  ;;  %1124 = vmatmul.bf16.vlgmr.msrb.gmra.mxu1 %v840_v1 }
 0xfac   :  { %v819_v5 = vadd.f32 %v818_v2, %v694_v62  ;;  %v832_v6 = vadd.f32 %v831_v4, %v695_v63  ;;  %v794_v8 = vpop.f32.mrf.mxu0  ;;  %v807_v12 = vpop.f32.mrf.mxu1 }
 0xfae   :  { %v837_v13 = vmax.f32 %v819_v5, 0.0  ;;  %v838_v14 = vmax.f32 %v832_v6, 0.0 }
 0xfb0   :  { %v841_v15 = vpack.c.bf16 %v837_v13, %v837_v13  ;;  %v842_v18 = vpack.c.bf16 %v838_v14, %v838_v14 }
 0xfb2   :  { %1137 = vmatmul.bf16.vlgmr.msrb.gmra.mxu2 %v841_v15  ;;  %1150 = vmatmul.bf16.vlgmr.msrb.gmra.mxu3 %v842_v18 }
 0xfb3   :  { %v820_v19 = vpop.f32.mrf.mxu2  ;;  %v833_v20 = vpop.f32.mrf.mxu3 }
0x1028   :  { %v1112_v21 = vpop.f32.mrf.mxu0  ;;  %v1125_v25 = vpop.f32.mrf.mxu1 }
0x1029   :  { %v1113_v27 = vadd.f32 %v1512_v26, %v1112_v21 }
0x102b   :  { %v1126_v30 = vadd.f32 %v1125_v25, %v1113_v27 }
0x1030   :  { %v1114_v28 = vpop.f32.mrf.mxu0  ;;  %v1127_v29 = vpop.f32.mrf.mxu1 }
0x1035   :  { %v1138_v32 = vpop.f32.mrf.mxu2  ;;  %v1151_v33 = vpop.f32.mrf.mxu3 }
0x1036   :  { %v1139_v34 = vadd.f32 %v1138_v32, %v1126_v30 }
0x1038   :  { %v1152_v35 = vadd.f32 %v1151_v33, %v1139_v34 }
0x103a   :  { %v1442_v36 = vmul.f32 -1.442695, %v1152_v35 }
0x103c   :  { %1561 = vpow2.f32 %v1442_v36 }
0x103d   :  { %v1140_v37 = vpop.f32.mrf.mxu2  ;;  %v1153_v38 = vpop.f32.mrf.mxu3 }
0x1042   :  { %v1562_v39 = vpop.eup %1561 }
0x1043   :  { %v1160_v40 = vadd.f32 1.0, %v1562_v39 }
0x1045   :  { %1563 = vrcp.f32 %v1160_v40  ;;  %v1172_v47 = vand.u32 2147483648, %v1160_v40  ;;  %v1170_v48 = vand.u32 2147483647, %v1160_v40  ;;  %vm1166_vm4 = vweird.f32 %v1160_v40 }
0x1047   :  { %v1173_v11 = vor.u32 1.1754944e-38, %v1172_v47  ;;  %vm1171_vm7 = vcmp.eq.f32.partialorder %v1170_v48, 8.507059e+37 }
0x104b   :  { %v1564_v42 = vpop.eup %1563 }
0x104c   :  { %v1162_v44 = vmul.f32 %v1564_v42, %v1160_v40  ;;  %vm1167_vm3 = vweird.f32 %v1564_v42 }
0x104d   :  { %vm1168_vm6 = vmor %vm1166_vm4, %vm1167_vm3 }
0x104e   :  { %v1163_v45 = vsub.f32 1.0, %v1162_v44 }
0x1050   :  { %v1164_v7 = vmul.f32 %v1564_v42, %v1163_v45 }
0x1052   :  { %v1165_v3 = vadd.f32 %v1564_v42, %v1164_v7 }
0x1054   :  { %v1169_v10 = vsel %vm1168_vm6, %v1564_v42, %v1165_v3 }
0x1055   :  { %v1174_v24 = vsel %vm1171_vm7, %v1173_v11, %v1169_v10 }
0x1056   :  { %v1179_v17 = vsel %vm1178_vm5, %v1174_v24, %v1152_v35 }
0x1057   :  { %1180 = vst [vmem:[#allocation11] sm:$0x3] %v1179_v17 }
0x1058   :  { %1191 = dma.vmem_to_hbm [thread:$0]  %s1187_s8, 32, %s1189_s11, [#allocation4]  }
0x1059   :  { %1715 = dma.done.wait [#allocation4], 32  }
0x105a   :  { %1716 = vsyncadd [#allocation4], 4294967264 }
0x105b   :  { %1196 = vsyncpa [#allocation3], 1 }
0x105c   :  { %1197 = vsyncpa [#allocation6], 1 }
0x105d   :  { %1198 = vsyncpa [#allocation9], 1 }
0x105e   :  { %1199 = vsyncpa [#allocation4], 1 }

</bundles_post_ra>
